<compile_context>
chip_gen: v6e
topology: v6e:2x2x1
jax: 0.10.0
libtpu: 0.0.40
codegen_flags: <defaults>
</compile_context>

<pallas_src>
import functools

import numpy as np
import jax
import jax.numpy as jnp
from jax.experimental import pallas as pl
from jax.experimental.pallas import tpu as pltpu


# ----------------------------- parameter setup ------------------------------


def _round_up(x: int, m: int) -> int:
    return ((x + m - 1) // m) * m


def hann_window(win_length: int) -> np.ndarray:
    # torch.hann_window(win_length) (periodic=True): 0.5*(1 - cos(2*pi*n/W))
    n = np.arange(win_length, dtype=np.float64)
    return 0.5 * (1.0 - np.cos(2.0 * np.pi * n / win_length))


def irfft_window_basis(n_fft: int, window: np.ndarray) -> np.ndarray:
    """Stacked real/imag IDFT basis (2N, n_fft) with the analysis window folded in.

    windowed_frame[t, :] = concat(Re(spec), Im(spec))[t, :] @ basis
    matches torch.fft.irfft(spec, n_fft, norm='backward') * window.
    """
    N = n_fft // 2 + 1
    k = np.arange(N, dtype=np.float64)[:, None]       # (N, 1)
    n = np.arange(n_fft, dtype=np.float64)[None, :]   # (1, n_fft)
    ang = 2.0 * np.pi * k * n / n_fft
    scale = np.full((N, 1), 2.0, dtype=np.float64)
    scale[0, 0] = 1.0
    if n_fft % 2 == 0:
        scale[N - 1, 0] = 1.0
    cb = scale * np.cos(ang) / n_fft
    sb = -scale * np.sin(ang) / n_fft
    # irfft ignores the imaginary part of DC (and Nyquist for even n_fft).
    sb[0, :] = 0.0
    if n_fft % 2 == 0:
        sb[N - 1, :] = 0.0
    return np.concatenate([cb, sb], axis=0) * window[None, :]   # (2N, n_fft)


def _pick_batch_block(B: int, r_ext: int) -> int:
    """Batch elements per grid step: raise the MXU M dim for small T, but keep
    >= 2 grid steps so both v7x TensorCores get work (megacore)."""
    best = 1
    for cand in range(2, min(B, 16) + 1):
        if B % cand != 0:
            continue
        if cand * r_ext > 1024:          # bound the (M, W_pad) frames temp
            continue
        if B // cand < 2:                # keep >= 2 parallel grid steps
            continue
        best = cand
    return best


# --------------------------------- kernel -----------------------------------


def _istft_kernel(spec_ref, basis_ref, inv_env_ref, out_ref, *,
                  bblk: int, r_ext: int, r_out: int, ratio: int, hop_pad: int):
    # Fused irfft + windowing on the MXU for the whole batch block:
    #   (bblk*r_ext, K_pad) @ (K_pad, ratio*hop_pad) -> f32 accumulation.
    frames = jnp.dot(spec_ref[0], basis_ref[...],
                     preferred_element_type=jnp.float32)
    inv_env = inv_env_ref[...]                         # (r_out, hop_pad)

    for b in range(bblk):                              # bblk is small & static
        base = b * r_ext
        # Value-based overlap-add: the spec block carries (ratio-1) leading
        # zero frames per batch element, so "hop-chunk k shifted down by k
        # rows" is the static row-slice at offset (ratio-1-k).  Lane offsets
        # k*hop_pad are 128-aligned, so no relayout of `frames` is needed.
        acc = frames[base + ratio - 1: base + ratio - 1 + r_out, 0:hop_pad]
        for k in range(1, ratio):
            off = base + ratio - 1 - k
            acc = acc + frames[off: off + r_out,
                               k * hop_pad:(k + 1) * hop_pad]
        # Window-envelope normalization (1/env is 0 outside the kept "same"
        # region and in the lane padding) + the single, full-lane store.
        out_ref[b] = (acc * inv_env).astype(out_ref.dtype)


# -------------------------------- wrapper ------------------------------------


def istft_same(spec_re, spec_im, *, n_fft: int, hop_length: int, win_length: int,
               matmul_dtype=jnp.bfloat16, out_dtype=jnp.float32):
    """spec_re / spec_im: real & imag parts, shape (B, N, T) (PyTorch layout)."""
    assert win_length == n_fft, "window broadcasts against the irfft output"
    assert win_length % hop_length == 0, "shifted OLA needs win % hop == 0"
    # TODO(synk): win % hop != 0 would need a per-remainder shift path.

    B, N, T = spec_re.shape
    assert N == n_fft // 2 + 1
    hop, win = hop_length, win_length
    ratio = win // hop
    pad = (win - hop) // 2
    l_full = (T - 1) * hop + win                  # == (T + ratio - 1) * hop
    l_out = l_full - 2 * pad
    m_rows = T + ratio - 1

    K = 2 * N
    K_pad = _round_up(K, 128)                     # matmul contraction (lanes)
    hop_pad = _round_up(hop, 128)                 # lane-dense OLA chunk width
    W_pad = ratio * hop_pad                       # matmul output columns
    r_out = _round_up(m_rows, 8)                  # OLA/output rows per batch
    r_ext = _round_up(r_out + ratio - 1, 16)      # spec rows per batch (16:
                                                  # keeps bf16/f32 row groups
                                                  # tile-aligned)

    bblk = _pick_batch_block(B, r_ext)
    G = B // bblk
    M_blk = bblk * r_ext

    # Constant: fused IDFT*window basis; each hop-chunk k occupies its own
    # 128-aligned column block [k*hop_pad, k*hop_pad + hop).
    window = hann_window(win)
    basis2d = irfft_window_basis(n_fft, window)               # (2N, win)
    basis_np = np.zeros((K_pad, W_pad), dtype=np.float64)
    for k in range(ratio):
        basis_np[:K, k * hop_pad:k * hop_pad + hop] = basis2d[:, k * hop:(k + 1) * hop]
    basis = jnp.asarray(basis_np, dtype=matmul_dtype)

    # Window envelope + NOLA check on the kept region.  1/env is laid out as
    # (r_out, hop_pad): zero outside [pad, l_full-pad), zero in lane padding.
    env = np.zeros(l_full, dtype=np.float64)
    for t in range(T):
        env[t * hop:t * hop + win] += window ** 2
    kept = env[pad:l_full - pad]
    assert (kept > 1e-11).all(), "NOLA check failed"
    inv_full = np.zeros(l_full, dtype=np.float64)
    inv_full[pad:l_full - pad] = 1.0 / kept
    inv_np = np.zeros((r_out, hop_pad), dtype=np.float64)
    inv_np[:m_rows, :hop] = inv_full.reshape(m_rows, hop)
    inv_env = jnp.asarray(inv_np, dtype=jnp.float32)

    # Kernel input: (B, T, 2N) = concat(Re, Im) along the contraction axis,
    # with (ratio-1) leading zero frames (the OLA shift), zero-padded to
    # (r_ext, K_pad) and grouped bblk batches per grid step.  The transpose /
    # concat / pad / cast / reshape chain is a single XLA producer pass.
    spec_cat = jnp.concatenate(
        [jnp.transpose(spec_re, (0, 2, 1)), jnp.transpose(spec_im, (0, 2, 1))],
        axis=-1).astype(matmul_dtype)                          # (B, T, 2N)
    spec_cat = jnp.pad(
        spec_cat,
        ((0, 0), (ratio - 1, r_ext - T - (ratio - 1)), (0, K_pad - K)))
    spec_cat = spec_cat.reshape(G, M_blk, K_pad)

    # VMEM budget: spec (x2 buffers) + constants (x1) + output (x2) + the f32
    # matmul-result temp + shifted-slice temporaries; capped vs physical VMEM.
    try:
        phys_vmem = int(pltpu.get_tpu_info().vmem_capacity_bytes)
    except Exception:
        phys_vmem = 64 * 1024 * 1024                  # v7x floor
    item = jnp.dtype(matmul_dtype).itemsize
    est = (2 * M_blk * K_pad * item                   # spec block (2 buffers)
           + 2 * K_pad * W_pad * item                 # basis (<=2 buffers)
           + 2 * r_out * hop_pad * 4                  # 1/env  (<=2 buffers)
           + 2 * bblk * r_out * hop_pad * 4           # output block (2 buffers)
           + M_blk * W_pad * 4                        # frames matmul result
           + (ratio + 1) * r_out * hop_pad * 4)       # OLA temporaries
    vmem_limit = min(max(2 * est, 8 << 20), int(0.55 * phys_vmem))
    vmem_limit = max(vmem_limit, min(est + (2 << 20), int(0.9 * phys_vmem)))

    kernel = functools.partial(_istft_kernel, bblk=bblk, r_ext=r_ext,
                               r_out=r_out, ratio=ratio, hop_pad=hop_pad)

    def build_call(single_buffer_consts: bool):
        const_kw = ({"pipeline_mode": pl.Buffered(1)}
                    if single_buffer_consts else {})
        grid_spec = pltpu.PrefetchScalarGridSpec(
            num_scalar_prefetch=0,
            grid=(G,),
            in_specs=[
                pl.BlockSpec((1, M_blk, K_pad), lambda g: (g, 0, 0)),   # spec
                pl.BlockSpec((K_pad, W_pad), lambda g: (0, 0), **const_kw),
                pl.BlockSpec((r_out, hop_pad), lambda g: (0, 0), **const_kw),
            ],
            out_specs=pl.BlockSpec((bblk, r_out, hop_pad), lambda g: (g, 0, 0)),
        )
        return pl.pallas_call(
            kernel,
            out_shape=jax.ShapeDtypeStruct((B, r_out, hop_pad), out_dtype),
            grid_spec=grid_spec,
            compiler_params=pltpu.CompilerParams(
                dimension_semantics=("parallel",),
                vmem_limit_bytes=int(vmem_limit)),
        )

    try:
        out = build_call(True)(spec_cat, basis, inv_env)
    except Exception:
        # pipeline_mode / pl.Buffered(1) not accepted on this JAX version:
        # fall back to default double buffering of the constant operands.
        out = build_call(False)(spec_cat, basis, inv_env)

    # (B, r_out, hop_pad) -> keep real lanes -> (B, r_out*hop) -> trim "same"
    # padding.  One fused XLA pass over the output.
    y = out[:, :, :hop].reshape(B, r_out * hop)[:, pad:pad + l_out]
    assert y.shape == (B, l_out)
    return y


# ------------------------------- reference -----------------------------------


def istft_reference_np(spec_re, spec_im, *, n_fft, hop_length, win_length):
    spec = (np.asarray(spec_re).astype(np.float64)
            + 1j * np.asarray(spec_im).astype(np.float64))
    B, N, T = spec.shape
    window = hann_window(win_length)
    ifft = np.fft.irfft(spec, n=n_fft, axis=1)           # (B, n_fft, T)
    ifft = ifft * window[None, :, None]
    pad = (win_length - hop_length) // 2
    l_full = (T - 1) * hop_length + win_length
    y = np.zeros((B, l_full))
    env = np.zeros(l_full)
    for t in range(T):
        y[:, t * hop_length:t * hop_length + win_length] += ifft[:, :, t]
        env[t * hop_length:t * hop_length + win_length] += window ** 2
    return (y[:, pad:l_full - pad] / env[pad:l_full - pad][None, :]).astype(np.float32)


# ---------------------------------- main -------------------------------------


if __name__ == "__main__":
    key = jax.random.PRNGKey(0)

    # Config 1: toy "same"-padding ISTFT (B=2), f32 + bf16 matmul paths.
    n_fft, hop_length, win_length = 16, 4, 16
    B, T = 2, 8
    N = n_fft // 2 + 1  # 9
    k1, k2, k3, k4 = jax.random.split(key, 4)
    spec_re = jax.random.normal(k1, (B, N, T), dtype=jnp.float32)
    spec_im = jax.random.normal(k2, (B, N, T), dtype=jnp.float32)

    y_ref = istft_reference_np(spec_re, spec_im, n_fft=n_fft,
                               hop_length=hop_length, win_length=win_length)
    pad = (win_length - hop_length) // 2
    l_out = (T - 1) * hop_length + win_length - 2 * pad

    # f32 matmul path: tight check against the f64 reference (accuracy path;
    # not intended for production on v5e's bf16-only MXU).
    y32 = istft_same(spec_re, spec_im, n_fft=n_fft, hop_length=hop_length,
                     win_length=win_length, matmul_dtype=jnp.float32)
    y32 = jax.block_until_ready(y32)
    assert y32.shape == (B, l_out), y32.shape
    np.testing.assert_allclose(np.asarray(y32), y_ref, rtol=1e-4, atol=1e-4)

    # bf16 matmul path (default; MXU-native on v5e/v6e/v7x): looser check.
    ybf = istft_same(spec_re, spec_im, n_fft=n_fft, hop_length=hop_length,
                     win_length=win_length)
    ybf = jax.block_until_ready(ybf)
    assert ybf.shape == (B, l_out), ybf.shape
    np.testing.assert_allclose(np.asarray(ybf), y_ref, rtol=5e-2, atol=5e-2)

    # Config 2: B=4 exercises batch blocking (bblk=2, grid=2) in f32.
    B2, T2 = 4, 12
    spec_re2 = jax.random.normal(k3, (B2, N, T2), dtype=jnp.float32)
    spec_im2 = jax.random.normal(k4, (B2, N, T2), dtype=jnp.float32)
    y_ref2 = istft_reference_np(spec_re2, spec_im2, n_fft=n_fft,
                                hop_length=hop_length, win_length=win_length)
    l_out2 = (T2 - 1) * hop_length + win_length - 2 * pad
    y2 = istft_same(spec_re2, spec_im2, n_fft=n_fft, hop_length=hop_length,
                    win_length=win_length, matmul_dtype=jnp.float32)
    y2 = jax.block_until_ready(y2)
    assert y2.shape == (B2, l_out2), y2.shape
    np.testing.assert_allclose(np.asarray(y2), y_ref2, rtol=1e-4, atol=1e-4)

    print("KERNEL_OK")
</pallas_src>

<mosaic_0001>
module attributes {stable_mosaic.version = 11 : i64} {
  func.func @_istft_kernel(%arg0: i32, %arg1: memref<1x32x128xf32, #tpu.memory_space<vmem>>, %arg2: memref<128x512xf32, #tpu.memory_space<vmem>>, %arg3: memref<16x128xf32, #tpu.memory_space<vmem>>, %arg4: memref<1x16x128xf32, #tpu.memory_space<vmem>>) attributes {dimension_semantics = [#tpu.dimension_semantics<parallel>], iteration_bounds = array<i64: 2>, scalar_prefetch = 0 : i64, scratch_operands = 0 : i64, tpu.core_type = #tpu.core_type<tc>, window_params = [{transform_indices = @transform_0, window_bounds = array<i64: 1, 32, 128>}, {pipeline_mode = #tpu.pipeline_mode<synchronous>, transform_indices = @transform_1, window_bounds = array<i64: 128, 512>}, {pipeline_mode = #tpu.pipeline_mode<synchronous>, transform_indices = @transform_2, window_bounds = array<i64: 16, 128>}, {transform_indices = @transform_3, window_bounds = array<i64: 1, 16, 128>}]} {
    %c0 = arith.constant 0 : index
    %c0_0 = arith.constant 0 : index
    %c0_1 = arith.constant 0 : index
    %0 = vector.load %arg1[%c0, %c0_0, %c0_1] : memref<1x32x128xf32, #tpu.memory_space<vmem>>, vector<1x32x128xf32>
    %1 = vector.shape_cast %0 : vector<1x32x128xf32> to vector<32x128xf32>
    %c0_2 = arith.constant 0 : index
    %c0_3 = arith.constant 0 : index
    %2 = vector.load %arg2[%c0_2, %c0_3] : memref<128x512xf32, #tpu.memory_space<vmem>>, vector<128x512xf32>
    %cst = arith.constant dense<0.000000e+00> : vector<32x512xf32>
    %3 = tpu.matmul %1, %2, %cst {dimension_numbers = #tpu.dot_dimension_numbers<[1], [0], [0], [1], [0, 0, 1, 1], [], []>} : vector<32x128xf32>, vector<128x512xf32>, vector<32x512xf32> -> vector<32x512xf32>
    %c0_4 = arith.constant 0 : index
    %c0_5 = arith.constant 0 : index
    %4 = vector.load %arg3[%c0_4, %c0_5] : memref<16x128xf32, #tpu.memory_space<vmem>>, vector<16x128xf32>
    %5 = vector.extract_strided_slice %3 {offsets = [3, 0], sizes = [16, 128], strides = [1, 1]} : vector<32x512xf32> to vector<16x128xf32>
    %6 = vector.extract_strided_slice %3 {offsets = [2, 128], sizes = [16, 128], strides = [1, 1]} : vector<32x512xf32> to vector<16x128xf32>
    %7 = arith.addf %5, %6 : vector<16x128xf32>
    %8 = vector.extract_strided_slice %3 {offsets = [1, 256], sizes = [16, 128], strides = [1, 1]} : vector<32x512xf32> to vector<16x128xf32>
    %9 = arith.addf %7, %8 : vector<16x128xf32>
    %10 = vector.extract_strided_slice %3 {offsets = [0, 384], sizes = [16, 128], strides = [1, 1]} : vector<32x512xf32> to vector<16x128xf32>
    %11 = arith.addf %9, %10 : vector<16x128xf32>
    %12 = arith.mulf %11, %4 : vector<16x128xf32>
    %c0_6 = arith.constant 0 : index
    %c0_7 = arith.constant 0 : index
    %c0_8 = arith.constant 0 : index
    %13 = vector.load %arg4[%c0_6, %c0_7, %c0_8] : memref<1x16x128xf32, #tpu.memory_space<vmem>>, vector<1x16x128xf32>
    %14 = vector.shape_cast %13 : vector<1x16x128xf32> to vector<16x128xf32>
    %15 = vector.shape_cast %12 : vector<16x128xf32> to vector<1x16x128xf32>
    tpu.vector_store %arg4[%c0_6, %c0_7, %c0_8], %15 {strides = array<i32>} : memref<1x16x128xf32, #tpu.memory_space<vmem>>, vector<1x16x128xf32>,
    return
  }
  func.func @transform_0(%arg0: i32) -> (i32, i32, i32) {
    %c0_i32 = arith.constant 0 : i32
    %c0_i32_0 = arith.constant 0 : i32
    %c0_i32_1 = arith.constant 0 : i32
    return %arg0, %c0_i32, %c0_i32_0 : i32, i32, i32
  }
  func.func @transform_1(%arg0: i32) -> (i32, i32) {
    %c0_i32 = arith.constant 0 : i32
    %c0_i32_0 = arith.constant 0 : i32
    %c0_i32_1 = arith.constant 0 : i32
    return %c0_i32, %c0_i32_0 : i32, i32
  }
  func.func @transform_2(%arg0: i32) -> (i32, i32) {
    %c0_i32 = arith.constant 0 : i32
    %c0_i32_0 = arith.constant 0 : i32
    %c0_i32_1 = arith.constant 0 : i32
    return %c0_i32, %c0_i32_0 : i32, i32
  }
  func.func @transform_3(%arg0: i32) -> (i32, i32, i32) {
    %c0_i32 = arith.constant 0 : i32
    %c0_i32_0 = arith.constant 0 : i32
    %c0_i32_1 = arith.constant 0 : i32
    return %arg0, %c0_i32, %c0_i32_0 : i32, i32, i32
  }
}

module attributes {stable_mosaic.version = 11 : i64} {
  func.func @_istft_kernel(%arg0: i32, %arg1: memref<1x32x128xf32, #tpu.memory_space<vmem>>, %arg2: memref<128x512xf32, #tpu.memory_space<vmem>>, %arg3: memref<16x128xf32, #tpu.memory_space<vmem>>, %arg4: memref<1x16x128xf32, #tpu.memory_space<vmem>>) attributes {dimension_semantics = [#tpu.dimension_semantics<parallel>], iteration_bounds = array<i64: 2>, scalar_prefetch = 0 : i64, scratch_operands = 0 : i64, tpu.core_type = #tpu.core_type<tc>, window_params = [{transform_indices = @transform_0, window_bounds = array<i64: 1, 32, 128>}, {pipeline_mode = #tpu.pipeline_mode<synchronous>, transform_indices = @transform_1, window_bounds = array<i64: 128, 512>}, {pipeline_mode = #tpu.pipeline_mode<synchronous>, transform_indices = @transform_2, window_bounds = array<i64: 16, 128>}, {transform_indices = @transform_3, window_bounds = array<i64: 1, 16, 128>}]} {
    %c0 = arith.constant 0 : index
    %c0_0 = arith.constant 0 : index
    %c0_1 = arith.constant 0 : index
    %0 = vector.load %arg1[%c0, %c0_0, %c0_1] : memref<1x32x128xf32, #tpu.memory_space<vmem>>, vector<1x32x128xf32>
    %1 = vector.shape_cast %0 : vector<1x32x128xf32> to vector<32x128xf32>
    %c0_2 = arith.constant 0 : index
    %c0_3 = arith.constant 0 : index
    %2 = vector.load %arg2[%c0_2, %c0_3] : memref<128x512xf32, #tpu.memory_space<vmem>>, vector<128x512xf32>
    %cst = arith.constant dense<0.000000e+00> : vector<32x512xf32>
    %3 = tpu.matmul %1, %2, %cst {dimension_numbers = #tpu.dot_dimension_numbers<[1], [0], [0], [1], [0, 0, 1, 1], [], []>} : vector<32x128xf32>, vector<128x512xf32>, vector<32x512xf32> -> vector<32x512xf32>
    %c0_4 = arith.constant 0 : index
    %c0_5 = arith.constant 0 : index
    %4 = vector.load %arg3[%c0_4, %c0_5] : memref<16x128xf32, #tpu.memory_space<vmem>>, vector<16x128xf32>
    %5 = vector.extract_strided_slice %3 {offsets = [3, 0], sizes = [16, 128], strides = [1, 1]} : vector<32x512xf32> to vector<16x128xf32>
    %6 = vector.extract_strided_slice %3 {offsets = [2, 128], sizes = [16, 128], strides = [1, 1]} : vector<32x512xf32> to vector<16x128xf32>
    %7 = arith.addf %5, %6 : vector<16x128xf32>
    %8 = vector.extract_strided_slice %3 {offsets = [1, 256], sizes = [16, 128], strides = [1, 1]} : vector<32x512xf32> to vector<16x128xf32>
    %9 = arith.addf %7, %8 : vector<16x128xf32>
    %10 = vector.extract_strided_slice %3 {offsets = [0, 384], sizes = [16, 128], strides = [1, 1]} : vector<32x512xf32> to vector<16x128xf32>
    %11 = arith.addf %9, %10 : vector<16x128xf32>
    %12 = arith.mulf %11, %4 : vector<16x128xf32>
    %c0_6 = arith.constant 0 : index
    %c0_7 = arith.constant 0 : index
    %c0_8 = arith.constant 0 : index
    %13 = vector.load %arg4[%c0_6, %c0_7, %c0_8] : memref<1x16x128xf32, #tpu.memory_space<vmem>>, vector<1x16x128xf32>
    %14 = vector.shape_cast %13 : vector<1x16x128xf32> to vector<16x128xf32>
    %15 = vector.shape_cast %12 : vector<16x128xf32> to vector<1x16x128xf32>
    tpu.vector_store %arg4[%c0_6, %c0_7, %c0_8], %15 {strides = array<i32>} : memref<1x16x128xf32, #tpu.memory_space<vmem>>, vector<1x16x128xf32>,
    return
  }
  func.func @transform_0(%arg0: i32) -> (i32, i32, i32) {
    %c0_i32 = arith.constant 0 : i32
    %c0_i32_0 = arith.constant 0 : i32
    %c0_i32_1 = arith.constant 0 : i32
    return %arg0, %c0_i32, %c0_i32_0 : i32, i32, i32
  }
  func.func @transform_1(%arg0: i32) -> (i32, i32) {
    %c0_i32 = arith.constant 0 : i32
    %c0_i32_0 = arith.constant 0 : i32
    %c0_i32_1 = arith.constant 0 : i32
    return %c0_i32, %c0_i32_0 : i32, i32
  }
  func.func @transform_2(%arg0: i32) -> (i32, i32) {
    %c0_i32 = arith.constant 0 : i32
    %c0_i32_0 = arith.constant 0 : i32
    %c0_i32_1 = arith.constant 0 : i32
    return %c0_i32, %c0_i32_0 : i32, i32
  }
  func.func @transform_3(%arg0: i32) -> (i32, i32, i32) {
    %c0_i32 = arith.constant 0 : i32
    %c0_i32_0 = arith.constant 0 : i32
    %c0_i32_1 = arith.constant 0 : i32
    return %arg0, %c0_i32, %c0_i32_0 : i32, i32, i32
  }
}

</mosaic_0001>

<bundles_post_ra>
// kernel: tpu_custom_call.1
= control target key start
LH: loop header
LB: loop body
LE: loop exit
PB: predicated region body
PF: predicated region fallthrough
CT: control target
= control target key end

     0   :  { %8 = vsyncpa [#allocation3], 0  ;;  %s1111_s0 = inlined_call_operand.hbm [shape: f32[2,32,128], index: 0, kind: input, shape index: {}]   ;;  %s1112_s1 = inlined_call_operand.hbm [shape: f32[128,512], index: 1, kind: input, shape index: {}]   ;;  %s1113_s2 = inlined_call_operand.hbm [shape: f32[16,128], index: 2, kind: input, shape index: {}]   ;;  %s1114_s3 = inlined_call_operand.hbm [shape: f32[2,16,128], index: 3, kind: output, shape index: {}]  }
   0x1   :  { %10 = vsyncpa [#allocation3 + $0x1], 0 }
   0x2   :  { %11 = vsyncpa [#allocation6], 0 }
   0x3   :  { %12 = vsyncpa [#allocation4], 0 }
   0x4   :  { %14 = vsyncpa [#allocation4 + $0x1], 0  ;;  %s898_s12 = smov 0   ;;  %s900_s13 = smov 0  }
   0x5   :  { %s902_s14 = smov 0   ;;  %s904_s15 = smov 0  }
   0x6 LB: > { %s919_s16 = sadd.s32 4294967295, %s865_s15   ;;  %s623_s17 = sadd.s32 4294967294, %s865_s15   ;;  %s865_s15 = sphi %s904_s15, %s1136_s15   ;;  %s861_s14 = sphi %s902_s14, %s1135_s14   ;;  %s857_s13 = sphi %s900_s13, %s1134_s13   ;;  %s853_s12 = sphi %s898_s12, %s1133_s12  }
   0x7   : > { %p40_p0 = scmp.ne.s32.totalorder %s857_s13, %s853_s12  ;;  %p1115_p1 = scmp.eq.s32.totalorder %s919_s16, 0 }
   0x8   : > { %p112_p3 = scmp.eq.s32.totalorder %s623_s17, 1  ;;  %p624_p5 = scmp.ge.s32.totalorder %s865_s15, 1 }
   0x9   : > { %p928_p4 = por %p1115_p1, %p40_p0  ;;  %p119_p7 = scmp.lt.s32.totalorder %s865_s15, 3 }
   0xa   : > { %p933_p6 = por %p112_p3, %p40_p0  ;;  %s867_s21 = smov [#allocation5]  }
   0xb   : > { %s1119_s18 = scalar_select %p928_p4, 1, 0 }
   0xc   : > { %s1120_s19 = scalar_select %p933_p6, 1, 0 }
   0xd   : > { %p938_p8 = pnand %p624_p5, %p119_p7  ;;  %s131_s22 = sshll.u32 %s867_s21, 4  ;;  %s132_s22 = int_to_ptr.vmem [resolvable:$true] %s131_s22 }
   0xe   : > { %s868_s24 = smov [#allocation7]   ;;  %s728_s26 = scalar_lea.vmem %s132_s22, 8192 }
   0xf   : > { %s1121_s20 = scalar_select %p938_p8, 1, 0 }
  0x10   : > { %p655_p9 = pneg %p938_p8  ;;  %s144_s25 = sshll.u32 %s868_s24, 4  ;;  %s145_s25 = int_to_ptr.vmem [resolvable:$true] %s144_s25 }
  0x11   : > { %p729_p13 = scmp.ne.s32.totalorder %s132_s22, %s728_s26  ;;  %p736_p5 = scmp.lt.s32.totalorder %s132_s22, %s132_s22 }
  0x12   : > { %p947_p11 = pnand %p655_p9, %p1115_p1  ;;  %p737_p7 = scmp.lt.s32.totalorder %s728_s26, %s728_s26 }
  0x14   : > { %p719_p12 = pneg %p947_p11  ;;  %p738_p10 = por %p737_p7, %p736_p5 }
  0x16   : > { %p731_p0 = pnand %p729_p13, %p719_p12 }
  0x18   : > { %p732_p3 = pneg %p731_p0 }
  0x1a   : > { %p739_p9 = pnand %p738_p10, %p732_p3 }
  0x1c   : > { %742 = shalt.err (!%p739_p9)
}
  0x1d   : > { %s869_s27 = smov 512   ;;  %s870_s28 = smov 32  }
  0x1e   : > { %658 = dma.hbm_to_vmem [thread:$0]  (!%p947_p11), %s1112_s1, 8192, %s132_s22, [#allocation6], %s869_s27, %s869_s27, %s870_s28  }
  0x1f   : > { %s754_s4 = scalar_lea.vmem %s145_s25, 256  ;;  %p762_p2 = scmp.lt.s32.totalorder %s145_s25, %s145_s25 }
  0x20   : > { %p755_p1 = scmp.ne.s32.totalorder %s145_s25, %s754_s4  ;;  %p763_p6 = scmp.lt.s32.totalorder %s754_s4, %s754_s4 }
  0x22   : > { %p757_p13 = pnand %p755_p1, %p719_p12  ;;  %p764_p5 = por %p763_p6, %p762_p2 }
  0x24   : > { %p758_p0 = pneg %p757_p13 }
  0x26   : > { %p765_p10 = pnand %p764_p5, %p758_p0 }
  0x28   : > { %768 = shalt.err (!%p765_p10)
}
  0x29   : > { %s871_s5 = smov 128   ;;  %s872_s6 = smov 8  }
  0x2a   : > { %661 = dma.hbm_to_vmem [thread:$0]  (!%p947_p11), %s1113_s2, 256, %s145_s25, [#allocation6], %s871_s5, %s871_s5, %s872_s6  }
  0x2b   : > { %s973_s9 = sadd.s32 1, %s865_s15   ;;  %s27_s11 = sadd.s32 1, %s861_s14 }
  0x2c   : > { %s24_s10 = ssub.s32 %s865_s15, %s973_s9  ;;  %p34_p2 = scmp.ne.s32.totalorder %s861_s14, %s857_s13 }
  0x2d   : > { %p25_p1 = scmp.eq.s32.totalorder %s24_s10, 0  ;;  %p35_p6 = scmp.eq.s32.totalorder %s865_s15, 0 }
  0x2e   : > { %p1123_p3 = scmp.eq.s32.totalorder %s919_s16, 1  ;;  %p672_p9 = scmp.lt.s32.totalorder %s865_s15, 2 }
  0x2f   : > { %s982_s17 = scalar_select %p25_p1, %s861_s14, %s27_s11  }
  0x30   : > { %p36_p12 = por %p35_p6, %p34_p2  ;;  %p986_p7 = por %p1123_p3, %p34_p2 }
  0x31   : > { %s158_s22 = sand.u32 1, %s861_s14   ;;  %s641_s24 = sshll.u32 %s865_s15, 9 }
  0x32   : > { %s1124_s21 = scalar_select %p986_p7, 1, 0 }
  0x33   : > { %s628_s23 = sshll.u32 %s158_s22, 5  ;;  %s996_s27 = scalar_lea.hbm %s1111_s0, %s641_s24 }
  0x34   : > { %s162_s28 = scalar_lea.vmem [#allocation2], %s628_s23  ;;  %p1000_p11 = pnand %p672_p9, %p36_p12 }
  0x35   : > { %s169_s29 = sshll.u32 %s162_s28, 4  ;;  %s1004_s4 = scalar_lea.sflag [#allocation3], %s158_s22  ;;  %s998_s29 = int_to_ptr.vmem [resolvable:$true] %s169_s29 }
  0x36   : > { %s769_s7 = scalar_lea.hbm %s996_s27, 512  ;;  %p771_p0 = pneg %p1000_p11 }
  0x37   : > { %p770_p13 = scmp.ne.s32.totalorder %s996_s27, %s769_s7  ;;  %s774_s11 = scalar_lea.hbm %s1111_s0, 1024 }
  0x38   : > { %p775_p1 = scmp.lt.s32.totalorder %s996_s27, %s1111_s0  ;;  %p776_p2 = scmp.lt.s32.totalorder %s774_s11, %s769_s7 }
  0x39   : > { %p772_p5 = pnand %p771_p0, %p770_p13 }
  0x3a   : > { %p777_p6 = por %p776_p2, %p775_p1 }
  0x3b   : > { %p773_p10 = pneg %p772_p5 }
  0x3d   : > { %p778_p12 = pnand %p777_p6, %p773_p10 }
  0x3f   : > { %781 = shalt.err (!%p778_p12)
}
  0x40   : > { %s782_s22 = scalar_lea.vmem %s998_s29, 512  ;;  %s873_s25 = smov [#allocation2]  }
  0x41   : > { %p783_p3 = scmp.ne.s32.totalorder %s998_s29, %s782_s22  ;;  %s787_s26 = sshll.u32 %s873_s25, 4  ;;  %s788_s26 = int_to_ptr.vmem [resolvable:$false] %s787_s26 }
  0x42   : > { %s789_s28 = scalar_lea.vmem %s788_s26, 1024  ;;  %p790_p5 = scmp.lt.s32.totalorder %s998_s29, %s788_s26 }
  0x43   : > { %p785_p9 = pnand %p783_p3, %p771_p0  ;;  %p791_p7 = scmp.lt.s32.totalorder %s789_s28, %s782_s22 }
  0x45   : > { %p786_p13 = pneg %p785_p9  ;;  %p792_p4 = por %p791_p7, %p790_p5 }
  0x47   : > { %p793_p8 = pnand %p792_p4, %p786_p13 }
  0x49   : > { %796 = shalt.err (!%p793_p8)
}
  0x4a   : > { %665 = dma.hbm_to_vmem [thread:$0]  (!%p1000_p11), %s996_s27, 512, %s998_s29, %s1004_s4, %s871_s5, %s871_s5, %s872_s6  }
  0x4b   : > { %p1126_p0 = scmp.ne.s32.totalorder %s1121_s20, 0 }
  0x4c   : > { %s1031_s7 = sand.u32 (!%p1126_p0), 1, %s857_s13   ;;  %p1127_p4 = scmp.ne.s32.totalorder (!%p1126_p0), %s1119_s18, 0 }
  0x4d   : > { %181 = sbr.rel (%p1126_p0) target bundleno = 348 (0x15c), region = 32  ;;  %s632_s8 = sshll.u32 (!%p1126_p0), %s1031_s7, 5 }
  0x4e   : > { %s184_s10 = scalar_lea.sflag (!%p1126_p0), [#allocation3], %s1031_s7  ;;  %s1035_s11 = scalar_lea.vmem (!%p1126_p0), [#allocation2], %s632_s8 }
  0x52   : > { %840 = dma.done.wait (%p1127_p4), %s184_s10, 512  }
  0x53   : > { %842 = vsyncadd (%p1127_p4), %s184_s10, 4294966784  ;;  %p1128_p8 = scmp.eq.s32.totalorder %s919_s16, 0 }
  0x55   : > { %844 = dma.done.wait (%p1128_p8), [#allocation6], 8448   ;;  %p1129_p7 = pmov %p1128_p8 }
  0x56   : > { %v874_v0 = vmov 0.0   ;;  %v283_v1 = vld [vmem:[#allocation5 + $0x1e8] sm:$0xff]  ;;  %v285_v2 = vld [vmem:[#allocation5 + $0x1f8] sm:$0xff]  ;;  %v282_v3 = vld [vmem:[#allocation5 + $0x1e0] sm:$0xff]  ;;  %vm464_vm0 = vcmask 1040384   ;;  %s635_s18 = sshll.u32 %s1031_s7, 4 }
  0x57   : > { %846 = vsyncadd (%p1129_p7), [#allocation6], 4294958848  ;;  %350 = vmatprep.mubr.f32.mxu0 %v874_v0  ;;  %437 = vmatprep.mubr.f32.mxu1 %v874_v0  ;;  %v284_v4 = vld [vmem:[#allocation5 + $0x1f0] sm:$0xff]  ;;  %v279_v5 = vld [vmem:[#allocation5 + $0x1c8] sm:$0xff]  ;;  %vm479_vm1 = vcmask 1041408   ;;  %vm493_vm2 = vcmask 1042432  }
  0x58   : > { %286 = vmatprep.subr.mxu0 %v283_v1  ;;  %373 = vmatprep.subr.mxu1 %v285_v2  ;;  %v281_v6 = vld [vmem:[#allocation5 + $0x1d8] sm:$0xff]  ;;  %v278_v7 = vld [vmem:[#allocation5 + $0x1c0] sm:$0xff]  ;;  %v280_v8 = vld [vmem:[#allocation5 + $0x1d0] sm:$0xff]  ;;  %s217_s20 = scalar_lea.vmem [#allocation8], %s635_s18  ;;  %s642_s6 = sshll.u32 %s919_s16, 8 }
  0x59   : > { %287 = vmatpush1.msra.mxu0 %v282_v3  ;;  %374 = vmatpush1.msra.mxu1 %v284_v4  ;;  %v275_v9 = vld [vmem:[#allocation5 + $0x1a8] sm:$0xff]  ;;  %v277_v10 = vld [vmem:[#allocation5 + $0x1b8] sm:$0xff]  ;;  %v274_v11 = vld [vmem:[#allocation5 + $0x1a0] sm:$0xff]  ;;  %s531_s5 = sshll.u32 %s217_s20, 4  ;;  %s1068_s30 = scalar_lea.hbm %s1114_s3, %s642_s6  ;;  %s1063_s5 = int_to_ptr.vmem [resolvable:$true] %s531_s5 }
  0x5a   : > { %288 = vmatprep.subr.mxu0 %v279_v5  ;;  %375 = vmatprep.subr.mxu1 %v281_v6  ;;  %v276_v12 = vld [vmem:[#allocation5 + $0x1b0] sm:$0xff]  ;;  %v271_v13 = vld [vmem:[#allocation5 + $0x188] sm:$0xff]  ;;  %v273_v14 = vld [vmem:[#allocation5 + $0x198] sm:$0xff]  ;;  %s518_s4 = scalar_lea.sflag [#allocation4], %s1031_s7  ;;  %s797_s23 = scalar_lea.vmem %s1063_s5, 256 }
  0x5b   : > { %289 = vmatpush1.msra.mxu0 %v278_v7  ;;  %376 = vmatpush1.msra.mxu1 %v280_v8  ;;  %v270_v15 = vld [vmem:[#allocation5 + $0x180] sm:$0xff]  ;;  %v272_v16 = vld [vmem:[#allocation5 + $0x190] sm:$0xff]  ;;  %v267_v17 = vld [vmem:[#allocation5 + $0x168] sm:$0xff]  ;;  %p798_p11 = scmp.ne.s32.totalorder %s1063_s5, %s797_s23  ;;  %p1130_p10 = scmp.ne.s32.totalorder %s1124_s21, 0 }
  0x5c   : > { %290 = vmatprep.subr.mxu0 %v275_v9  ;;  %377 = vmatprep.subr.mxu1 %v277_v10  ;;  %v269_v18 = vld [vmem:[#allocation5 + $0x178] sm:$0xff]  ;;  %v266_v19 = vld [vmem:[#allocation5 + $0x160] sm:$0xff]  ;;  %v268_v20 = vld [vmem:[#allocation5 + $0x170] sm:$0xff]  ;;  %s875_s16 = smov [#allocation8]  }
  0x5d   : > { %291 = vmatpush1.msra.mxu0 %v274_v11  ;;  %378 = vmatpush1.msra.mxu1 %v276_v12  ;;  %v263_v21 = vld [vmem:[#allocation5 + $0x148] sm:$0xff]  ;;  %v265_v22 = vld [vmem:[#allocation5 + $0x158] sm:$0xff]  ;;  %v262_v23 = vld [vmem:[#allocation5 + $0x140] sm:$0xff]  ;;  %p799_p1 = pnand %p798_p11, %p1130_p10  ;;  %s801_s24 = sshll.u32 %s875_s16, 4  ;;  %s802_s24 = int_to_ptr.vmem [resolvable:$false] %s801_s24 }
  0x5e   : > { %292 = vmatprep.subr.mxu0 %v271_v13  ;;  %379 = vmatprep.subr.mxu1 %v273_v14  ;;  %v264_v24 = vld [vmem:[#allocation5 + $0x150] sm:$0xff]  ;;  %v259_v25 = vld [vmem:[#allocation5 + $0x128] sm:$0xff]  ;;  %v261_v26 = vld [vmem:[#allocation5 + $0x138] sm:$0xff]  ;;  %s803_s22 = scalar_lea.vmem %s802_s24, 512  ;;  %p804_p6 = scmp.lt.s32.totalorder %s1063_s5, %s802_s24 }
  0x5f   : > { %293 = vmatpush1.msra.mxu0 %v270_v15  ;;  %380 = vmatpush1.msra.mxu1 %v272_v16  ;;  %v258_v27 = vld [vmem:[#allocation5 + $0x120] sm:$0xff]  ;;  %v260_v28 = vld [vmem:[#allocation5 + $0x130] sm:$0xff]  ;;  %v255_v29 = vld [vmem:[#allocation5 + $0x108] sm:$0xff]  ;;  %p800_p2 = pneg %p799_p1  ;;  %p805_p12 = scmp.lt.s32.totalorder %s803_s22, %s797_s23 }
  0x60   : > { %294 = vmatprep.subr.mxu0 %v267_v17  ;;  %381 = vmatprep.subr.mxu1 %v269_v18  ;;  %v257_v30 = vld [vmem:[#allocation5 + $0x118] sm:$0xff]  ;;  %v254_v31 = vld [vmem:[#allocation5 + $0x100] sm:$0xff]  ;;  %v256_v32 = vld [vmem:[#allocation5 + $0x110] sm:$0xff] }
  0x61   : > { %295 = vmatpush1.msra.mxu0 %v266_v19  ;;  %382 = vmatpush1.msra.mxu1 %v268_v20  ;;  %v251_v33 = vld [vmem:[#allocation5 + $0xe8] sm:$0xff]  ;;  %v253_v34 = vld [vmem:[#allocation5 + $0xf8] sm:$0xff]  ;;  %v250_v35 = vld [vmem:[#allocation5 + $0xe0] sm:$0xff]  ;;  %p806_p3 = por %p805_p12, %p804_p6 }
  0x62   : > { %296 = vmatprep.subr.mxu0 %v263_v21  ;;  %383 = vmatprep.subr.mxu1 %v265_v22  ;;  %v252_v36 = vld [vmem:[#allocation5 + $0xf0] sm:$0xff]  ;;  %v247_v37 = vld [vmem:[#allocation5 + $0xc8] sm:$0xff]  ;;  %v249_v38 = vld [vmem:[#allocation5 + $0xd8] sm:$0xff] }
  0x63   : > { %297 = vmatpush1.msra.mxu0 %v262_v23  ;;  %384 = vmatpush1.msra.mxu1 %v264_v24  ;;  %v246_v39 = vld [vmem:[#allocation5 + $0xc0] sm:$0xff]  ;;  %v248_v40 = vld [vmem:[#allocation5 + $0xd0] sm:$0xff]  ;;  %v243_v41 = vld [vmem:[#allocation5 + $0xa8] sm:$0xff]  ;;  %p807_p9 = pnand %p806_p3, %p800_p2 }
  0x64   : > { %298 = vmatprep.subr.mxu0 %v259_v25  ;;  %385 = vmatprep.subr.mxu1 %v261_v26  ;;  %v245_v42 = vld [vmem:[#allocation5 + $0xb8] sm:$0xff]  ;;  %v242_v43 = vld [vmem:[#allocation5 + $0xa0] sm:$0xff]  ;;  %v244_v44 = vld [vmem:[#allocation5 + $0xb0] sm:$0xff] }
  0x65   : > { %299 = vmatpush1.msra.mxu0 %v258_v27  ;;  %386 = vmatpush1.msra.mxu1 %v260_v28  ;;  %v239_v45 = vld [vmem:[#allocation5 + $0x88] sm:$0xff]  ;;  %v241_v46 = vld [vmem:[#allocation5 + $0x98] sm:$0xff]  ;;  %v238_v47 = vld [vmem:[#allocation5 + $0x80] sm:$0xff] }
  0x66   : > { %300 = vmatprep.subr.mxu0 %v255_v29  ;;  %387 = vmatprep.subr.mxu1 %v257_v30  ;;  %v240_v48 = vld [vmem:[#allocation5 + $0x90] sm:$0xff]  ;;  %v235_v49 = vld [vmem:[#allocation5 + $0x68] sm:$0xff]  ;;  %v237_v50 = vld [vmem:[#allocation5 + $0x78] sm:$0xff] }
  0x67   : > { %301 = vmatpush1.msra.mxu0 %v254_v31  ;;  %388 = vmatpush1.msra.mxu1 %v256_v32  ;;  %v234_v51 = vld [vmem:[#allocation5 + $0x60] sm:$0xff]  ;;  %v236_v52 = vld [vmem:[#allocation5 + $0x70] sm:$0xff]  ;;  %v231_v53 = vld [vmem:[#allocation5 + $0x48] sm:$0xff] }
  0x68   : > { %302 = vmatprep.subr.mxu0 %v251_v33  ;;  %389 = vmatprep.subr.mxu1 %v253_v34  ;;  %v233_v54 = vld [vmem:[#allocation5 + $0x58] sm:$0xff]  ;;  %v230_v55 = vld [vmem:[#allocation5 + $0x40] sm:$0xff]  ;;  %v232_v56 = vld [vmem:[#allocation5 + $0x50] sm:$0xff] }
  0x69   : > { %303 = vmatpush1.msra.mxu0 %v250_v35  ;;  %390 = vmatpush1.msra.mxu1 %v252_v36  ;;  %v227_v57 = vld [vmem:[#allocation5 + $0x28] sm:$0xff]  ;;  %v229_v58 = vld [vmem:[#allocation5 + $0x38] sm:$0xff]  ;;  %v226_v59 = vld [vmem:[#allocation5 + $0x20] sm:$0xff] }
  0x6a   : > { %304 = vmatprep.subr.mxu0 %v247_v37  ;;  %391 = vmatprep.subr.mxu1 %v249_v38  ;;  %v228_v60 = vld [vmem:[#allocation5 + $0x30] sm:$0xff]  ;;  %v223_v61 = vld [vmem:[#allocation5 + $0x8] sm:$0xff]  ;;  %v225_v62 = vld [vmem:[#allocation5 + $0x18] sm:$0xff] }
  0x6b   : > { %305 = vmatpush1.msra.mxu0 %v246_v39  ;;  %392 = vmatpush1.msra.mxu1 %v248_v40  ;;  %v222_v63 = vld [vmem:[#allocation5] sm:$0xff]  ;;  %v224_v1 = vld [vmem:[#allocation5 + $0x10] sm:$0xff]  ;;  %v219_v3 = vld [vmem:[%s1035_s11 + $0x8] sm:$0xff] }
  0x6c   : > { %306 = vmatprep.subr.mxu0 %v243_v41  ;;  %393 = vmatprep.subr.mxu1 %v245_v42  ;;  %v218_v2 = vld [vmem:[%s1035_s11] sm:$0xff]  ;;  %v220_v4 = vld [vmem:[%s1035_s11 + $0x10] sm:$0xff]  ;;  %v221_v5 = vld [vmem:[%s1035_s11 + $0x18] sm:$0xff] }
  0x6d   : > { %307 = vmatpush1.msra.mxu0 %v242_v43  ;;  %394 = vmatpush1.msra.mxu1 %v244_v44  ;;  %v459_v12 = vld [vmem:[#allocation7] sm:$0xff]  ;;  %v460_v19 = vld [vmem:[#allocation7 + $0x8] sm:$0xff] }
  0x6e   : > { %308 = vmatprep.subr.mxu0 %v239_v45  ;;  %395 = vmatprep.subr.mxu1 %v241_v46  ;;  %v505_v16 = vrot.slane %v459_v12, 5  ;;  %v506_v28 = vrot.slane %v460_v19, 5 }
  0x6f   : > { %309 = vmatpush1.msra.mxu0 %v238_v47  ;;  %396 = vmatpush1.msra.mxu1 %v240_v48 }
  0x70   : > { %310 = vmatprep.subr.mxu0 %v235_v49  ;;  %397 = vmatprep.subr.mxu1 %v237_v50  ;;  %v507_v40 = vsel %vm493_vm2, %v505_v16, %v506_v28 }
  0x71   : > { %311 = vmatpush1.msra.mxu0 %v234_v51  ;;  %398 = vmatpush1.msra.mxu1 %v236_v52 }
  0x72   : > { %312 = vmatprep.subr.mxu0 %v231_v53  ;;  %399 = vmatprep.subr.mxu1 %v233_v54 }
  0x73   : > { %313 = vmatpush1.msra.mxu0 %v230_v55  ;;  %400 = vmatpush1.msra.mxu1 %v232_v56 }
  0x74   : > { %314 = vmatprep.subr.mxu0 %v227_v57  ;;  %401 = vmatprep.subr.mxu1 %v229_v58 }
  0x75   : > { %315 = vmatpush1.msra.mxu0 %v226_v59  ;;  %402 = vmatpush1.msra.mxu1 %v228_v60 }
  0x76   : > { %316 = vmatprep.subr.mxu0 %v223_v61  ;;  %403 = vmatprep.subr.mxu1 %v225_v62 }
  0x77   : > { %317 = vmatpush1.msra.mxu0 %v222_v63  ;;  %404 = vmatpush1.msra.mxu1 %v224_v1 }
  0x78   : > { %351 = vmatmul.mubr.f32.vlgmr.msra.gmra.mxu0 %v218_v2  ;;  %438 = vmatmul.mubr.f32.vlgmr.msra.gmra.mxu1 %v218_v2 }
  0x79   : > { %356 = vmatprep.mubr.f32.mxu0 %v874_v0  ;;  %443 = vmatprep.mubr.f32.mxu1 %v874_v0 }
  0x7c   : > { %357 = vmatmul.mubr.f32.gmra.mxu0 %v219_v3  ;;  %444 = vmatmul.mubr.f32.gmra.mxu1 %v219_v3 }
  0x7d   : > { %362 = vmatprep.mubr.f32.mxu0 %v874_v0  ;;  %449 = vmatprep.mubr.f32.mxu1 %v874_v0 }
  0x80   : > { %363 = vmatmul.mubr.f32.gmra.mxu0 %v220_v4  ;;  %450 = vmatmul.mubr.f32.gmra.mxu1 %v220_v4 }
  0x81   : > { %368 = vmatprep.mubr.f32.mxu0 %v874_v0  ;;  %454 = vmatprep.mubr.f32.mxu1 %v874_v0 }
  0x84   : > { %369 = vmatmul.mubr.f32.gmra.mxu0 %v221_v5  ;;  %455 = vmatmul.mubr.f32.gmra.mxu1 %v221_v5 }
 0x138   : > { %v352_v6 = vpop.f32.mrf.mxu0  ;;  %v439_v7 = vpop.f32.mrf.mxu1 }
 0x139   : > { %v480_v10 = vrot.slane %v439_v7, 6 }
 0x13a   : > { %v354_v8 = vpop.f32.mrf.mxu0  ;;  %v441_v9 = vpop.f32.mrf.mxu1 }
 0x13b   : > { %v465_v11 = vrot.slane %v354_v8, 7  ;;  %v494_v20 = vrot.slane %v441_v9, 5 }
 0x13c   : > { %v358_v13 = vpop.f32.mrf.mxu0  ;;  %v445_v14 = vpop.f32.mrf.mxu1 }
 0x13d   : > { %v473_v15 = vadd.f32 %v465_v11, %v352_v6  ;;  %v481_v21 = vrot.slane %v445_v14, 6 }
 0x13e   : > { %v360_v17 = vpop.f32.mrf.mxu0  ;;  %v447_v18 = vpop.f32.mrf.mxu1 }
 0x13f   : > { %v488_v0 = vadd.f32 %v480_v10, %v473_v15  ;;  %v466_v22 = vrot.slane %v360_v17, 7  ;;  %v495_v27 = vrot.slane %v447_v18, 5  ;;  %v482_v33 = vsel %vm479_vm1, %v480_v10, %v481_v21 }
 0x140   : > { %v364_v23 = vpop.f32.mrf.mxu0  ;;  %v451_v24 = vpop.f32.mrf.mxu1 }
 0x141   : > { %v500_v25 = vadd.f32 %v494_v20, %v488_v0  ;;  %v467_v26 = vsel %vm464_vm0, %v465_v11, %v466_v22  ;;  %v483_v34 = vrot.slane %v451_v24, 6  ;;  %v496_v39 = vsel %vm493_vm2, %v494_v20, %v495_v27 }
 0x142   : > { %v474_v29 = vadd.f32 %v467_v26, %v358_v13  ;;  %v366_v30 = vpop.f32.mrf.mxu0  ;;  %v453_v31 = vpop.f32.mrf.mxu1 }
 0x143   : > { %v511_v32 = vmul.f32 %v505_v16, %v500_v25  ;;  %v468_v35 = vrot.slane %v366_v30, 7  ;;  %v484_v46 = vsel %vm479_vm1, %v481_v21, %v483_v34 }
 0x144   : > { %v489_v36 = vadd.f32 %v482_v33, %v474_v29  ;;  %v370_v37 = vpop.f32.mrf.mxu0  ;;  %v456_v38 = vpop.f32.mrf.mxu1 }
 0x145   : > { %514 = vst [vmem:[%s217_s20 - $0x3] sm:$0xf8] %v511_v32  ;;  %v469_v41 = vsel %vm464_vm0, %v466_v22, %v468_v35 }
 0x146   : > { %v501_v42 = vadd.f32 %v496_v39, %v489_v36  ;;  %v475_v43 = vadd.f32 %v469_v41, %v364_v23  ;;  %v371_v44 = vpop.f32.mrf.mxu0  ;;  %v457_v45 = vpop.f32.mrf.mxu1 }
 0x148   : > { %v512_v47 = vmul.f32 %v507_v40, %v501_v42  ;;  %v490_v48 = vadd.f32 %v484_v46, %v475_v43 }
 0x14a   : > { %515 = vst [vmem:[%s217_s20 + $0x5] sm:$0xff] %v512_v47  ;;  %v502_v49 = vadd.f32 %v495_v27, %v490_v48 }
 0x14c   : > { %v513_v50 = vmul.f32 %v506_v28, %v502_v49 }
 0x14e   : > { %516 = vst [vmem:[%s217_s20 + $0xd] sm:$0x7] %v513_v50 }
 0x14f   : > { %810 = shalt.err (!%p807_p9)
}
 0x150   : > { %s811_s25 = scalar_lea.hbm %s1068_s30, 256  ;;  %s815_s8 = scalar_lea.hbm %s1114_s3, 512 }
 0x151   : > { %p812_p13 = scmp.ne.s32.totalorder %s1068_s30, %s811_s25  ;;  %p816_p4 = scmp.lt.s32.totalorder %s1068_s30, %s1114_s3 }
 0x152   : > { %p817_p8 = scmp.lt.s32.totalorder %s815_s8, %s811_s25 }
 0x153   : > { %p813_p5 = pnand %p812_p13, %p1130_p10 }
 0x154   : > { %p818_p7 = por %p817_p8, %p816_p4 }
 0x155   : > { %p814_p0 = pneg %p813_p5 }
 0x157   : > { %p819_p11 = pnand %p818_p7, %p814_p0 }
 0x159   : > { %822 = shalt.err (!%p819_p11)
}
 0x15a   : > { %s876_s18 = smov 128   ;;  %s877_s20 = smov 8  }
 0x15b   : > { %653 = dma.vmem_to_hbm [thread:$0]  (%p1130_p10), %s1063_s5, 256, %s1068_s30, %s518_s4, %s876_s18, %s876_s18, %s877_s20  }
 0x15c PF: > { %s546_s6 = sand.u32 1, %s853_s12   ;;  %p1131_p1 = scmp.ne.s32.totalorder %s1120_s19, 0 }
 0x15d   : > { %p1132_p2 = scmp.ge.s32.totalorder %s865_s15, 2  ;;  %s547_s27 = scalar_lea.sflag [#allocation4], %s546_s6 }
 0x15f   : > { %p667_p6 = pnand %p1132_p2, %p1131_p1 }
 0x161   : > { %p668_p12 = pneg %p667_p6 }
 0x163   : > { %848 = dma.done.wait (%p668_p12), %s547_s27, 256  }
 0x164   : > { %850 = vsyncadd (%p668_p12), %s547_s27, 4294967040  ;;  %p17_p3 = scmp.ge.s32.totalorder %s973_s9, 4   ;;  %s1133_s12 = smov %s857_s13 }
 0x165   : > { %s1134_s13 = smov %s861_s14  ;;  %s1135_s14 = smov %s982_s17 }
 0x166   : > { %s1136_s15 = smov %s973_s9  ;;  %19 = sbr.rel (!%p17_p3) target bundleno = 6 (0x6), region = 85 }
 0x16b   :  { %552 = vsyncpa [#allocation3], 1 }
 0x16c   :  { %554 = vsyncpa [#allocation3 + $0x1], 1 }
 0x16d   :  { %555 = vsyncpa [#allocation6], 1 }
 0x16e   :  { %556 = vsyncpa [#allocation4], 1 }
 0x16f   :  { %558 = vsyncpa [#allocation4 + $0x1], 1 }

// kernel: tpu_custom_call.1
= control target key start
LH: loop header
LB: loop body
LE: loop exit
PB: predicated region body
PF: predicated region fallthrough
CT: control target
= control target key end

     0   :  { %8 = vsyncpa [#allocation3], 0  ;;  %s1111_s0 = inlined_call_operand.hbm [shape: f32[2,32,128], index: 0, kind: input, shape index: {}]   ;;  %s1112_s1 = inlined_call_operand.hbm [shape: f32[128,512], index: 1, kind: input, shape index: {}]   ;;  %s1113_s2 = inlined_call_operand.hbm [shape: f32[16,128], index: 2, kind: input, shape index: {}]   ;;  %s1114_s3 = inlined_call_operand.hbm [shape: f32[2,16,128], index: 3, kind: output, shape index: {}]  }
   0x1   :  { %10 = vsyncpa [#allocation3 + $0x1], 0 }
   0x2   :  { %11 = vsyncpa [#allocation6], 0 }
   0x3   :  { %12 = vsyncpa [#allocation4], 0 }
   0x4   :  { %14 = vsyncpa [#allocation4 + $0x1], 0  ;;  %s898_s12 = smov 0   ;;  %s900_s13 = smov 0  }
   0x5   :  { %s902_s14 = smov 0   ;;  %s904_s15 = smov 0  }
   0x6 LB: > { %s919_s16 = sadd.s32 4294967295, %s865_s15   ;;  %s623_s17 = sadd.s32 4294967294, %s865_s15   ;;  %s865_s15 = sphi %s904_s15, %s1136_s15   ;;  %s861_s14 = sphi %s902_s14, %s1135_s14   ;;  %s857_s13 = sphi %s900_s13, %s1134_s13   ;;  %s853_s12 = sphi %s898_s12, %s1133_s12  }
   0x7   : > { %p40_p0 = scmp.ne.s32.totalorder %s857_s13, %s853_s12  ;;  %p1115_p1 = scmp.eq.s32.totalorder %s919_s16, 0 }
   0x8   : > { %p112_p3 = scmp.eq.s32.totalorder %s623_s17, 1  ;;  %p624_p5 = scmp.ge.s32.totalorder %s865_s15, 1 }
   0x9   : > { %p928_p4 = por %p1115_p1, %p40_p0  ;;  %p119_p7 = scmp.lt.s32.totalorder %s865_s15, 3 }
   0xa   : > { %p933_p6 = por %p112_p3, %p40_p0  ;;  %s867_s21 = smov [#allocation5]  }
   0xb   : > { %s1119_s18 = scalar_select %p928_p4, 1, 0 }
   0xc   : > { %s1120_s19 = scalar_select %p933_p6, 1, 0 }
   0xd   : > { %p938_p8 = pnand %p624_p5, %p119_p7  ;;  %s131_s22 = sshll.u32 %s867_s21, 4  ;;  %s132_s22 = int_to_ptr.vmem [resolvable:$true] %s131_s22 }
   0xe   : > { %s868_s24 = smov [#allocation7]   ;;  %s728_s26 = scalar_lea.vmem %s132_s22, 8192 }
   0xf   : > { %s1121_s20 = scalar_select %p938_p8, 1, 0 }
  0x10   : > { %p655_p9 = pneg %p938_p8  ;;  %s144_s25 = sshll.u32 %s868_s24, 4  ;;  %s145_s25 = int_to_ptr.vmem [resolvable:$true] %s144_s25 }
  0x11   : > { %p729_p13 = scmp.ne.s32.totalorder %s132_s22, %s728_s26  ;;  %p736_p5 = scmp.lt.s32.totalorder %s132_s22, %s132_s22 }
  0x12   : > { %p947_p11 = pnand %p655_p9, %p1115_p1  ;;  %p737_p7 = scmp.lt.s32.totalorder %s728_s26, %s728_s26 }
  0x14   : > { %p719_p12 = pneg %p947_p11  ;;  %p738_p10 = por %p737_p7, %p736_p5 }
  0x16   : > { %p731_p0 = pnand %p729_p13, %p719_p12 }
  0x18   : > { %p732_p3 = pneg %p731_p0 }
  0x1a   : > { %p739_p9 = pnand %p738_p10, %p732_p3 }
  0x1c   : > { %742 = shalt.err (!%p739_p9)
}
  0x1d   : > { %s869_s27 = smov 512   ;;  %s870_s28 = smov 32  }
  0x1e   : > { %658 = dma.hbm_to_vmem [thread:$0]  (!%p947_p11), %s1112_s1, 8192, %s132_s22, [#allocation6], %s869_s27, %s869_s27, %s870_s28  }
  0x1f   : > { %s754_s4 = scalar_lea.vmem %s145_s25, 256  ;;  %p762_p2 = scmp.lt.s32.totalorder %s145_s25, %s145_s25 }
  0x20   : > { %p755_p1 = scmp.ne.s32.totalorder %s145_s25, %s754_s4  ;;  %p763_p6 = scmp.lt.s32.totalorder %s754_s4, %s754_s4 }
  0x22   : > { %p757_p13 = pnand %p755_p1, %p719_p12  ;;  %p764_p5 = por %p763_p6, %p762_p2 }
  0x24   : > { %p758_p0 = pneg %p757_p13 }
  0x26   : > { %p765_p10 = pnand %p764_p5, %p758_p0 }
  0x28   : > { %768 = shalt.err (!%p765_p10)
}
  0x29   : > { %s871_s5 = smov 128   ;;  %s872_s6 = smov 8  }
  0x2a   : > { %661 = dma.hbm_to_vmem [thread:$0]  (!%p947_p11), %s1113_s2, 256, %s145_s25, [#allocation6], %s871_s5, %s871_s5, %s872_s6  }
  0x2b   : > { %s973_s9 = sadd.s32 1, %s865_s15   ;;  %s27_s11 = sadd.s32 1, %s861_s14 }
  0x2c   : > { %s24_s10 = ssub.s32 %s865_s15, %s973_s9  ;;  %p34_p2 = scmp.ne.s32.totalorder %s861_s14, %s857_s13 }
  0x2d   : > { %p25_p1 = scmp.eq.s32.totalorder %s24_s10, 0  ;;  %p35_p6 = scmp.eq.s32.totalorder %s865_s15, 0 }
  0x2e   : > { %p1123_p3 = scmp.eq.s32.totalorder %s919_s16, 1  ;;  %p672_p9 = scmp.lt.s32.totalorder %s865_s15, 2 }
  0x2f   : > { %s982_s17 = scalar_select %p25_p1, %s861_s14, %s27_s11  }
  0x30   : > { %p36_p12 = por %p35_p6, %p34_p2  ;;  %p986_p7 = por %p1123_p3, %p34_p2 }
  0x31   : > { %s158_s22 = sand.u32 1, %s861_s14   ;;  %s641_s24 = sshll.u32 %s865_s15, 9 }
  0x32   : > { %s1124_s21 = scalar_select %p986_p7, 1, 0 }
  0x33   : > { %s628_s23 = sshll.u32 %s158_s22, 5  ;;  %s996_s27 = scalar_lea.hbm %s1111_s0, %s641_s24 }
  0x34   : > { %s162_s28 = scalar_lea.vmem [#allocation2], %s628_s23  ;;  %p1000_p11 = pnand %p672_p9, %p36_p12 }
  0x35   : > { %s169_s29 = sshll.u32 %s162_s28, 4  ;;  %s1004_s4 = scalar_lea.sflag [#allocation3], %s158_s22  ;;  %s998_s29 = int_to_ptr.vmem [resolvable:$true] %s169_s29 }
  0x36   : > { %s769_s7 = scalar_lea.hbm %s996_s27, 512  ;;  %p771_p0 = pneg %p1000_p11 }
  0x37   : > { %p770_p13 = scmp.ne.s32.totalorder %s996_s27, %s769_s7  ;;  %s774_s11 = scalar_lea.hbm %s1111_s0, 1024 }
  0x38   : > { %p775_p1 = scmp.lt.s32.totalorder %s996_s27, %s1111_s0  ;;  %p776_p2 = scmp.lt.s32.totalorder %s774_s11, %s769_s7 }
  0x39   : > { %p772_p5 = pnand %p771_p0, %p770_p13 }
  0x3a   : > { %p777_p6 = por %p776_p2, %p775_p1 }
  0x3b   : > { %p773_p10 = pneg %p772_p5 }
  0x3d   : > { %p778_p12 = pnand %p777_p6, %p773_p10 }
  0x3f   : > { %781 = shalt.err (!%p778_p12)
}
  0x40   : > { %s782_s22 = scalar_lea.vmem %s998_s29, 512  ;;  %s873_s25 = smov [#allocation2]  }
  0x41   : > { %p783_p3 = scmp.ne.s32.totalorder %s998_s29, %s782_s22  ;;  %s787_s26 = sshll.u32 %s873_s25, 4  ;;  %s788_s26 = int_to_ptr.vmem [resolvable:$false] %s787_s26 }
  0x42   : > { %s789_s28 = scalar_lea.vmem %s788_s26, 1024  ;;  %p790_p5 = scmp.lt.s32.totalorder %s998_s29, %s788_s26 }
  0x43   : > { %p785_p9 = pnand %p783_p3, %p771_p0  ;;  %p791_p7 = scmp.lt.s32.totalorder %s789_s28, %s782_s22 }
  0x45   : > { %p786_p13 = pneg %p785_p9  ;;  %p792_p4 = por %p791_p7, %p790_p5 }
  0x47   : > { %p793_p8 = pnand %p792_p4, %p786_p13 }
  0x49   : > { %796 = shalt.err (!%p793_p8)
}
  0x4a   : > { %665 = dma.hbm_to_vmem [thread:$0]  (!%p1000_p11), %s996_s27, 512, %s998_s29, %s1004_s4, %s871_s5, %s871_s5, %s872_s6  }
  0x4b   : > { %p1126_p0 = scmp.ne.s32.totalorder %s1121_s20, 0 }
  0x4c   : > { %s1031_s7 = sand.u32 (!%p1126_p0), 1, %s857_s13   ;;  %p1127_p4 = scmp.ne.s32.totalorder (!%p1126_p0), %s1119_s18, 0 }
  0x4d   : > { %181 = sbr.rel (%p1126_p0) target bundleno = 348 (0x15c), region = 32  ;;  %s632_s8 = sshll.u32 (!%p1126_p0), %s1031_s7, 5 }
  0x4e   : > { %s184_s10 = scalar_lea.sflag (!%p1126_p0), [#allocation3], %s1031_s7  ;;  %s1035_s11 = scalar_lea.vmem (!%p1126_p0), [#allocation2], %s632_s8 }
  0x52   : > { %840 = dma.done.wait (%p1127_p4), %s184_s10, 512  }
  0x53   : > { %842 = vsyncadd (%p1127_p4), %s184_s10, 4294966784  ;;  %p1128_p8 = scmp.eq.s32.totalorder %s919_s16, 0 }
  0x55   : > { %844 = dma.done.wait (%p1128_p8), [#allocation6], 8448   ;;  %p1129_p7 = pmov %p1128_p8 }
  0x56   : > { %v874_v0 = vmov 0.0   ;;  %v283_v1 = vld [vmem:[#allocation5 + $0x1e8] sm:$0xff]  ;;  %v285_v2 = vld [vmem:[#allocation5 + $0x1f8] sm:$0xff]  ;;  %v282_v3 = vld [vmem:[#allocation5 + $0x1e0] sm:$0xff]  ;;  %vm464_vm0 = vcmask 1040384   ;;  %s635_s18 = sshll.u32 %s1031_s7, 4 }
  0x57   : > { %846 = vsyncadd (%p1129_p7), [#allocation6], 4294958848  ;;  %350 = vmatprep.mubr.f32.mxu0 %v874_v0  ;;  %437 = vmatprep.mubr.f32.mxu1 %v874_v0  ;;  %v284_v4 = vld [vmem:[#allocation5 + $0x1f0] sm:$0xff]  ;;  %v279_v5 = vld [vmem:[#allocation5 + $0x1c8] sm:$0xff]  ;;  %vm479_vm1 = vcmask 1041408   ;;  %vm493_vm2 = vcmask 1042432  }
  0x58   : > { %286 = vmatprep.subr.mxu0 %v283_v1  ;;  %373 = vmatprep.subr.mxu1 %v285_v2  ;;  %v281_v6 = vld [vmem:[#allocation5 + $0x1d8] sm:$0xff]  ;;  %v278_v7 = vld [vmem:[#allocation5 + $0x1c0] sm:$0xff]  ;;  %v280_v8 = vld [vmem:[#allocation5 + $0x1d0] sm:$0xff]  ;;  %s217_s20 = scalar_lea.vmem [#allocation8], %s635_s18  ;;  %s642_s6 = sshll.u32 %s919_s16, 8 }
  0x59   : > { %287 = vmatpush1.msra.mxu0 %v282_v3  ;;  %374 = vmatpush1.msra.mxu1 %v284_v4  ;;  %v275_v9 = vld [vmem:[#allocation5 + $0x1a8] sm:$0xff]  ;;  %v277_v10 = vld [vmem:[#allocation5 + $0x1b8] sm:$0xff]  ;;  %v274_v11 = vld [vmem:[#allocation5 + $0x1a0] sm:$0xff]  ;;  %s531_s5 = sshll.u32 %s217_s20, 4  ;;  %s1068_s30 = scalar_lea.hbm %s1114_s3, %s642_s6  ;;  %s1063_s5 = int_to_ptr.vmem [resolvable:$true] %s531_s5 }
  0x5a   : > { %288 = vmatprep.subr.mxu0 %v279_v5  ;;  %375 = vmatprep.subr.mxu1 %v281_v6  ;;  %v276_v12 = vld [vmem:[#allocation5 + $0x1b0] sm:$0xff]  ;;  %v271_v13 = vld [vmem:[#allocation5 + $0x188] sm:$0xff]  ;;  %v273_v14 = vld [vmem:[#allocation5 + $0x198] sm:$0xff]  ;;  %s518_s4 = scalar_lea.sflag [#allocation4], %s1031_s7  ;;  %s797_s23 = scalar_lea.vmem %s1063_s5, 256 }
  0x5b   : > { %289 = vmatpush1.msra.mxu0 %v278_v7  ;;  %376 = vmatpush1.msra.mxu1 %v280_v8  ;;  %v270_v15 = vld [vmem:[#allocation5 + $0x180] sm:$0xff]  ;;  %v272_v16 = vld [vmem:[#allocation5 + $0x190] sm:$0xff]  ;;  %v267_v17 = vld [vmem:[#allocation5 + $0x168] sm:$0xff]  ;;  %p798_p11 = scmp.ne.s32.totalorder %s1063_s5, %s797_s23  ;;  %p1130_p10 = scmp.ne.s32.totalorder %s1124_s21, 0 }
  0x5c   : > { %290 = vmatprep.subr.mxu0 %v275_v9  ;;  %377 = vmatprep.subr.mxu1 %v277_v10  ;;  %v269_v18 = vld [vmem:[#allocation5 + $0x178] sm:$0xff]  ;;  %v266_v19 = vld [vmem:[#allocation5 + $0x160] sm:$0xff]  ;;  %v268_v20 = vld [vmem:[#allocation5 + $0x170] sm:$0xff]  ;;  %s875_s16 = smov [#allocation8]  }
  0x5d   : > { %291 = vmatpush1.msra.mxu0 %v274_v11  ;;  %378 = vmatpush1.msra.mxu1 %v276_v12  ;;  %v263_v21 = vld [vmem:[#allocation5 + $0x148] sm:$0xff]  ;;  %v265_v22 = vld [vmem:[#allocation5 + $0x158] sm:$0xff]  ;;  %v262_v23 = vld [vmem:[#allocation5 + $0x140] sm:$0xff]  ;;  %p799_p1 = pnand %p798_p11, %p1130_p10  ;;  %s801_s24 = sshll.u32 %s875_s16, 4  ;;  %s802_s24 = int_to_ptr.vmem [resolvable:$false] %s801_s24 }
  0x5e   : > { %292 = vmatprep.subr.mxu0 %v271_v13  ;;  %379 = vmatprep.subr.mxu1 %v273_v14  ;;  %v264_v24 = vld [vmem:[#allocation5 + $0x150] sm:$0xff]  ;;  %v259_v25 = vld [vmem:[#allocation5 + $0x128] sm:$0xff]  ;;  %v261_v26 = vld [vmem:[#allocation5 + $0x138] sm:$0xff]  ;;  %s803_s22 = scalar_lea.vmem %s802_s24, 512  ;;  %p804_p6 = scmp.lt.s32.totalorder %s1063_s5, %s802_s24 }
  0x5f   : > { %293 = vmatpush1.msra.mxu0 %v270_v15  ;;  %380 = vmatpush1.msra.mxu1 %v272_v16  ;;  %v258_v27 = vld [vmem:[#allocation5 + $0x120] sm:$0xff]  ;;  %v260_v28 = vld [vmem:[#allocation5 + $0x130] sm:$0xff]  ;;  %v255_v29 = vld [vmem:[#allocation5 + $0x108] sm:$0xff]  ;;  %p800_p2 = pneg %p799_p1  ;;  %p805_p12 = scmp.lt.s32.totalorder %s803_s22, %s797_s23 }
  0x60   : > { %294 = vmatprep.subr.mxu0 %v267_v17  ;;  %381 = vmatprep.subr.mxu1 %v269_v18  ;;  %v257_v30 = vld [vmem:[#allocation5 + $0x118] sm:$0xff]  ;;  %v254_v31 = vld [vmem:[#allocation5 + $0x100] sm:$0xff]  ;;  %v256_v32 = vld [vmem:[#allocation5 + $0x110] sm:$0xff] }
  0x61   : > { %295 = vmatpush1.msra.mxu0 %v266_v19  ;;  %382 = vmatpush1.msra.mxu1 %v268_v20  ;;  %v251_v33 = vld [vmem:[#allocation5 + $0xe8] sm:$0xff]  ;;  %v253_v34 = vld [vmem:[#allocation5 + $0xf8] sm:$0xff]  ;;  %v250_v35 = vld [vmem:[#allocation5 + $0xe0] sm:$0xff]  ;;  %p806_p3 = por %p805_p12, %p804_p6 }
  0x62   : > { %296 = vmatprep.subr.mxu0 %v263_v21  ;;  %383 = vmatprep.subr.mxu1 %v265_v22  ;;  %v252_v36 = vld [vmem:[#allocation5 + $0xf0] sm:$0xff]  ;;  %v247_v37 = vld [vmem:[#allocation5 + $0xc8] sm:$0xff]  ;;  %v249_v38 = vld [vmem:[#allocation5 + $0xd8] sm:$0xff] }
  0x63   : > { %297 = vmatpush1.msra.mxu0 %v262_v23  ;;  %384 = vmatpush1.msra.mxu1 %v264_v24  ;;  %v246_v39 = vld [vmem:[#allocation5 + $0xc0] sm:$0xff]  ;;  %v248_v40 = vld [vmem:[#allocation5 + $0xd0] sm:$0xff]  ;;  %v243_v41 = vld [vmem:[#allocation5 + $0xa8] sm:$0xff]  ;;  %p807_p9 = pnand %p806_p3, %p800_p2 }
  0x64   : > { %298 = vmatprep.subr.mxu0 %v259_v25  ;;  %385 = vmatprep.subr.mxu1 %v261_v26  ;;  %v245_v42 = vld [vmem:[#allocation5 + $0xb8] sm:$0xff]  ;;  %v242_v43 = vld [vmem:[#allocation5 + $0xa0] sm:$0xff]  ;;  %v244_v44 = vld [vmem:[#allocation5 + $0xb0] sm:$0xff] }
  0x65   : > { %299 = vmatpush1.msra.mxu0 %v258_v27  ;;  %386 = vmatpush1.msra.mxu1 %v260_v28  ;;  %v239_v45 = vld [vmem:[#allocation5 + $0x88] sm:$0xff]  ;;  %v241_v46 = vld [vmem:[#allocation5 + $0x98] sm:$0xff]  ;;  %v238_v47 = vld [vmem:[#allocation5 + $0x80] sm:$0xff] }
  0x66   : > { %300 = vmatprep.subr.mxu0 %v255_v29  ;;  %387 = vmatprep.subr.mxu1 %v257_v30  ;;  %v240_v48 = vld [vmem:[#allocation5 + $0x90] sm:$0xff]  ;;  %v235_v49 = vld [vmem:[#allocation5 + $0x68] sm:$0xff]  ;;  %v237_v50 = vld [vmem:[#allocation5 + $0x78] sm:$0xff] }
  0x67   : > { %301 = vmatpush1.msra.mxu0 %v254_v31  ;;  %388 = vmatpush1.msra.mxu1 %v256_v32  ;;  %v234_v51 = vld [vmem:[#allocation5 + $0x60] sm:$0xff]  ;;  %v236_v52 = vld [vmem:[#allocation5 + $0x70] sm:$0xff]  ;;  %v231_v53 = vld [vmem:[#allocation5 + $0x48] sm:$0xff] }
  0x68   : > { %302 = vmatprep.subr.mxu0 %v251_v33  ;;  %389 = vmatprep.subr.mxu1 %v253_v34  ;;  %v233_v54 = vld [vmem:[#allocation5 + $0x58] sm:$0xff]  ;;  %v230_v55 = vld [vmem:[#allocation5 + $0x40] sm:$0xff]  ;;  %v232_v56 = vld [vmem:[#allocation5 + $0x50] sm:$0xff] }
  0x69   : > { %303 = vmatpush1.msra.mxu0 %v250_v35  ;;  %390 = vmatpush1.msra.mxu1 %v252_v36  ;;  %v227_v57 = vld [vmem:[#allocation5 + $0x28] sm:$0xff]  ;;  %v229_v58 = vld [vmem:[#allocation5 + $0x38] sm:$0xff]  ;;  %v226_v59 = vld [vmem:[#allocation5 + $0x20] sm:$0xff] }
  0x6a   : > { %304 = vmatprep.subr.mxu0 %v247_v37  ;;  %391 = vmatprep.subr.mxu1 %v249_v38  ;;  %v228_v60 = vld [vmem:[#allocation5 + $0x30] sm:$0xff]  ;;  %v223_v61 = vld [vmem:[#allocation5 + $0x8] sm:$0xff]  ;;  %v225_v62 = vld [vmem:[#allocation5 + $0x18] sm:$0xff] }
  0x6b   : > { %305 = vmatpush1.msra.mxu0 %v246_v39  ;;  %392 = vmatpush1.msra.mxu1 %v248_v40  ;;  %v222_v63 = vld [vmem:[#allocation5] sm:$0xff]  ;;  %v224_v1 = vld [vmem:[#allocation5 + $0x10] sm:$0xff]  ;;  %v219_v3 = vld [vmem:[%s1035_s11 + $0x8] sm:$0xff] }
  0x6c   : > { %306 = vmatprep.subr.mxu0 %v243_v41  ;;  %393 = vmatprep.subr.mxu1 %v245_v42  ;;  %v218_v2 = vld [vmem:[%s1035_s11] sm:$0xff]  ;;  %v220_v4 = vld [vmem:[%s1035_s11 + $0x10] sm:$0xff]  ;;  %v221_v5 = vld [vmem:[%s1035_s11 + $0x18] sm:$0xff] }
  0x6d   : > { %307 = vmatpush1.msra.mxu0 %v242_v43  ;;  %394 = vmatpush1.msra.mxu1 %v244_v44  ;;  %v459_v12 = vld [vmem:[#allocation7] sm:$0xff]  ;;  %v460_v19 = vld [vmem:[#allocation7 + $0x8] sm:$0xff] }
  0x6e   : > { %308 = vmatprep.subr.mxu0 %v239_v45  ;;  %395 = vmatprep.subr.mxu1 %v241_v46  ;;  %v505_v16 = vrot.slane %v459_v12, 5  ;;  %v506_v28 = vrot.slane %v460_v19, 5 }
  0x6f   : > { %309 = vmatpush1.msra.mxu0 %v238_v47  ;;  %396 = vmatpush1.msra.mxu1 %v240_v48 }
  0x70   : > { %310 = vmatprep.subr.mxu0 %v235_v49  ;;  %397 = vmatprep.subr.mxu1 %v237_v50  ;;  %v507_v40 = vsel %vm493_vm2, %v505_v16, %v506_v28 }
  0x71   : > { %311 = vmatpush1.msra.mxu0 %v234_v51  ;;  %398 = vmatpush1.msra.mxu1 %v236_v52 }
  0x72   : > { %312 = vmatprep.subr.mxu0 %v231_v53  ;;  %399 = vmatprep.subr.mxu1 %v233_v54 }
  0x73   : > { %313 = vmatpush1.msra.mxu0 %v230_v55  ;;  %400 = vmatpush1.msra.mxu1 %v232_v56 }
  0x74   : > { %314 = vmatprep.subr.mxu0 %v227_v57  ;;  %401 = vmatprep.subr.mxu1 %v229_v58 }
  0x75   : > { %315 = vmatpush1.msra.mxu0 %v226_v59  ;;  %402 = vmatpush1.msra.mxu1 %v228_v60 }
  0x76   : > { %316 = vmatprep.subr.mxu0 %v223_v61  ;;  %403 = vmatprep.subr.mxu1 %v225_v62 }
  0x77   : > { %317 = vmatpush1.msra.mxu0 %v222_v63  ;;  %404 = vmatpush1.msra.mxu1 %v224_v1 }
  0x78   : > { %351 = vmatmul.mubr.f32.vlgmr.msra.gmra.mxu0 %v218_v2  ;;  %438 = vmatmul.mubr.f32.vlgmr.msra.gmra.mxu1 %v218_v2 }
  0x79   : > { %356 = vmatprep.mubr.f32.mxu0 %v874_v0  ;;  %443 = vmatprep.mubr.f32.mxu1 %v874_v0 }
  0x7c   : > { %357 = vmatmul.mubr.f32.gmra.mxu0 %v219_v3  ;;  %444 = vmatmul.mubr.f32.gmra.mxu1 %v219_v3 }
  0x7d   : > { %362 = vmatprep.mubr.f32.mxu0 %v874_v0  ;;  %449 = vmatprep.mubr.f32.mxu1 %v874_v0 }
  0x80   : > { %363 = vmatmul.mubr.f32.gmra.mxu0 %v220_v4  ;;  %450 = vmatmul.mubr.f32.gmra.mxu1 %v220_v4 }
  0x81   : > { %368 = vmatprep.mubr.f32.mxu0 %v874_v0  ;;  %454 = vmatprep.mubr.f32.mxu1 %v874_v0 }
  0x84   : > { %369 = vmatmul.mubr.f32.gmra.mxu0 %v221_v5  ;;  %455 = vmatmul.mubr.f32.gmra.mxu1 %v221_v5 }
 0x138   : > { %v352_v6 = vpop.f32.mrf.mxu0  ;;  %v439_v7 = vpop.f32.mrf.mxu1 }
 0x139   : > { %v480_v10 = vrot.slane %v439_v7, 6 }
 0x13a   : > { %v354_v8 = vpop.f32.mrf.mxu0  ;;  %v441_v9 = vpop.f32.mrf.mxu1 }
 0x13b   : > { %v465_v11 = vrot.slane %v354_v8, 7  ;;  %v494_v20 = vrot.slane %v441_v9, 5 }
 0x13c   : > { %v358_v13 = vpop.f32.mrf.mxu0  ;;  %v445_v14 = vpop.f32.mrf.mxu1 }
 0x13d   : > { %v473_v15 = vadd.f32 %v465_v11, %v352_v6  ;;  %v481_v21 = vrot.slane %v445_v14, 6 }
 0x13e   : > { %v360_v17 = vpop.f32.mrf.mxu0  ;;  %v447_v18 = vpop.f32.mrf.mxu1 }
 0x13f   : > { %v488_v0 = vadd.f32 %v480_v10, %v473_v15  ;;  %v466_v22 = vrot.slane %v360_v17, 7  ;;  %v495_v27 = vrot.slane %v447_v18, 5  ;;  %v482_v33 = vsel %vm479_vm1, %v480_v10, %v481_v21 }
 0x140   : > { %v364_v23 = vpop.f32.mrf.mxu0  ;;  %v451_v24 = vpop.f32.mrf.mxu1 }
 0x141   : > { %v500_v25 = vadd.f32 %v494_v20, %v488_v0  ;;  %v467_v26 = vsel %vm464_vm0, %v465_v11, %v466_v22  ;;  %v483_v34 = vrot.slane %v451_v24, 6  ;;  %v496_v39 = vsel %vm493_vm2, %v494_v20, %v495_v27 }
 0x142   : > { %v474_v29 = vadd.f32 %v467_v26, %v358_v13  ;;  %v366_v30 = vpop.f32.mrf.mxu0  ;;  %v453_v31 = vpop.f32.mrf.mxu1 }
 0x143   : > { %v511_v32 = vmul.f32 %v505_v16, %v500_v25  ;;  %v468_v35 = vrot.slane %v366_v30, 7  ;;  %v484_v46 = vsel %vm479_vm1, %v481_v21, %v483_v34 }
 0x144   : > { %v489_v36 = vadd.f32 %v482_v33, %v474_v29  ;;  %v370_v37 = vpop.f32.mrf.mxu0  ;;  %v456_v38 = vpop.f32.mrf.mxu1 }
 0x145   : > { %514 = vst [vmem:[%s217_s20 - $0x3] sm:$0xf8] %v511_v32  ;;  %v469_v41 = vsel %vm464_vm0, %v466_v22, %v468_v35 }
 0x146   : > { %v501_v42 = vadd.f32 %v496_v39, %v489_v36  ;;  %v475_v43 = vadd.f32 %v469_v41, %v364_v23  ;;  %v371_v44 = vpop.f32.mrf.mxu0  ;;  %v457_v45 = vpop.f32.mrf.mxu1 }
 0x148   : > { %v512_v47 = vmul.f32 %v507_v40, %v501_v42  ;;  %v490_v48 = vadd.f32 %v484_v46, %v475_v43 }
 0x14a   : > { %515 = vst [vmem:[%s217_s20 + $0x5] sm:$0xff] %v512_v47  ;;  %v502_v49 = vadd.f32 %v495_v27, %v490_v48 }
 0x14c   : > { %v513_v50 = vmul.f32 %v506_v28, %v502_v49 }
 0x14e   : > { %516 = vst [vmem:[%s217_s20 + $0xd] sm:$0x7] %v513_v50 }
 0x14f   : > { %810 = shalt.err (!%p807_p9)
}
 0x150   : > { %s811_s25 = scalar_lea.hbm %s1068_s30, 256  ;;  %s815_s8 = scalar_lea.hbm %s1114_s3, 512 }
 0x151   : > { %p812_p13 = scmp.ne.s32.totalorder %s1068_s30, %s811_s25  ;;  %p816_p4 = scmp.lt.s32.totalorder %s1068_s30, %s1114_s3 }
 0x152   : > { %p817_p8 = scmp.lt.s32.totalorder %s815_s8, %s811_s25 }
 0x153   : > { %p813_p5 = pnand %p812_p13, %p1130_p10 }
 0x154   : > { %p818_p7 = por %p817_p8, %p816_p4 }
 0x155   : > { %p814_p0 = pneg %p813_p5 }
 0x157   : > { %p819_p11 = pnand %p818_p7, %p814_p0 }
 0x159   : > { %822 = shalt.err (!%p819_p11)
}
 0x15a   : > { %s876_s18 = smov 128   ;;  %s877_s20 = smov 8  }
 0x15b   : > { %653 = dma.vmem_to_hbm [thread:$0]  (%p1130_p10), %s1063_s5, 256, %s1068_s30, %s518_s4, %s876_s18, %s876_s18, %s877_s20  }
 0x15c PF: > { %s546_s6 = sand.u32 1, %s853_s12   ;;  %p1131_p1 = scmp.ne.s32.totalorder %s1120_s19, 0 }
 0x15d   : > { %p1132_p2 = scmp.ge.s32.totalorder %s865_s15, 2  ;;  %s547_s27 = scalar_lea.sflag [#allocation4], %s546_s6 }
 0x15f   : > { %p667_p6 = pnand %p1132_p2, %p1131_p1 }
 0x161   : > { %p668_p12 = pneg %p667_p6 }
 0x163   : > { %848 = dma.done.wait (%p668_p12), %s547_s27, 256  }
 0x164   : > { %850 = vsyncadd (%p668_p12), %s547_s27, 4294967040  ;;  %p17_p3 = scmp.ge.s32.totalorder %s973_s9, 4   ;;  %s1133_s12 = smov %s857_s13 }
 0x165   : > { %s1134_s13 = smov %s861_s14  ;;  %s1135_s14 = smov %s982_s17 }
 0x166   : > { %s1136_s15 = smov %s973_s9  ;;  %19 = sbr.rel (!%p17_p3) target bundleno = 6 (0x6), region = 85 }
 0x16b   :  { %552 = vsyncpa [#allocation3], 1 }
 0x16c   :  { %554 = vsyncpa [#allocation3 + $0x1], 1 }
 0x16d   :  { %555 = vsyncpa [#allocation6], 1 }
 0x16e   :  { %556 = vsyncpa [#allocation4], 1 }
 0x16f   :  { %558 = vsyncpa [#allocation4 + $0x1], 1 }

</bundles_post_ra>
